<compile_context>
chip_gen: v6e
topology: v6e:2x2x1
jax: 0.10.0
libtpu: 0.0.40
codegen_flags: <defaults>
</compile_context>

<pallas_src>
from functools import partial

import jax
import jax.numpy as jnp
from jax.experimental import pallas as pl
from jax.experimental.pallas import tpu as pltpu

# ---------------- small synthetic configuration ----------------------------
N    = 2            # batch
C0   = 32           # input feature channels
T    = 8            # temporal length (clips)
K    = 3            # temporal kernel size ("same" padding = 1)
C1   = 32           # conv1 out channels
C2   = 16           # conv2 out channels
H    = 16           # MLP hidden size
T1   = T // 2       # after maxpool 1
T2   = T1 // 2      # after maxpool 2
PAD  = (K - 1) // 2
OUT_LANES = 128     # minimum fused lane width (keeps matmuls / stores dense)
MARGIN = 8          # sublane-aligned top margin of the conv1 scratch


# ---------------- Pallas kernel: everything in one grid step ----------------
def _fused_edtcn_kernel(x_ref, w_ref, b_ref, o_ref, h1_sc, h2_sc):
    """Whole ED-TCN forward (all judges, whole padded batch) in one step.

    x_ref : (NB*T + 2, C0) f32   NTC-flattened input, one zero pad row per end
    w_ref : (K*C0 + K*LW + T2*LW + LW, LW) bf16   all layers, judges fused
            block-diagonally along lanes, zero-padded to LW lanes
    b_ref : (4, LW) f32          the four bias rows (zero-padded)
    o_ref : (NB, LW) f32         sigmoid probabilities, judge j in lane j
    h1_sc : (MARGIN + NB*T + MARGIN, LW) f32 scratch (conv1 out, aligned)
    h2_sc : (NB*T1, LW) f32 scratch (conv2 out)
    """
    lw  = w_ref.shape[1]
    nr  = x_ref.shape[0] - 2        # NB * T
    nb  = nr // T
    nr1 = nb * T1

    w1_off = 0
    w2_off = w1_off + K * C0
    w3_off = w2_off + K * lw
    w4_off = w3_off + T2 * lw

    f32, bf16 = jnp.float32, jnp.bfloat16

    # ---- conv1 ("same" pad, kernel=3): 3 shifted-window matmuls ------------
    # Per-sample boundary masks computed in-kernel (no 1-lane mask inputs).
    t_loc = jax.lax.broadcasted_iota(jnp.int32, (nr, C0), 0) % T
    prev   = jnp.where(t_loc != 0,     x_ref[0:nr, :],     0.0)
    center = x_ref[1:nr + 1, :]
    nxt    = jnp.where(t_loc != T - 1, x_ref[2:nr + 2, :], 0.0)

    acc1 = jnp.dot(prev.astype(bf16), w_ref[w1_off:w1_off + C0, :],
                   preferred_element_type=f32)
    acc1 = acc1 + jnp.dot(center.astype(bf16),
                          w_ref[w1_off + C0:w1_off + 2 * C0, :],
                          preferred_element_type=f32)
    acc1 = acc1 + jnp.dot(nxt.astype(bf16),
                          w_ref[w1_off + 2 * C0:w1_off + 3 * C0, :],
                          preferred_element_type=f32)
    h1 = jnp.maximum(acc1 + b_ref[0:1, :], 0.0)            # (nr, lw) f32

    # Sublane-aligned store (start row 8, nr rows, lw lanes -> unmasked vst).
    # The scratch pad rows are intentionally NOT zero-filled: every read that
    # can touch them is select-masked (jnp.where) below, so any garbage they
    # hold never reaches arithmetic that survives the mask.
    h1_sc[MARGIN:MARGIN + nr, :] = h1

    # ---- maxpool1d(2) + conv2: 3 tap matmuls over strided pooled windows ---
    t1_loc = jax.lax.broadcasted_iota(jnp.int32, (nr1, lw), 0) % T1
    p_not_first = t1_loc != 0
    p_not_last  = t1_loc != T1 - 1

    acc2 = jnp.zeros((nr1, lw), f32)
    for k in range(K):
        base = MARGIN + 2 * (k - 1)
        a = h1_sc[pl.ds(base,     nr1, stride=2), :]
        b = h1_sc[pl.ds(base + 1, nr1, stride=2), :]
        tap = jnp.maximum(a, b)
        if k == 0:
            tap = jnp.where(p_not_first, tap, 0.0)
        elif k == K - 1:
            tap = jnp.where(p_not_last, tap, 0.0)
        acc2 = acc2 + jnp.dot(tap.astype(bf16),
                              w_ref[w2_off + k * lw:w2_off + (k + 1) * lw, :],
                              preferred_element_type=f32)
    h2 = jnp.maximum(acc2 + b_ref[1:2, :], 0.0)            # (nr1, lw)
    h2_sc[...] = h2

    # ---- maxpool1d(2) + MLP head: T2 per-pooled-time matmuls ---------------
    acc3 = jnp.zeros((nb, lw), f32)
    for u in range(T2):
        a = h2_sc[pl.ds(2 * u,     nb, stride=T1), :]
        b = h2_sc[pl.ds(2 * u + 1, nb, stride=T1), :]
        pooled = jnp.maximum(a, b)
        acc3 = acc3 + jnp.dot(pooled.astype(bf16),
                              w_ref[w3_off + u * lw:w3_off + (u + 1) * lw, :],
                              preferred_element_type=f32)
    h3 = jnp.maximum(acc3 + b_ref[2:3, :], 0.0)            # (nb, lw)

    # ---- final per-judge linear + sigmoid, lane/sublane-dense store --------
    logits = jnp.dot(h3.astype(bf16), w_ref[w4_off:w4_off + lw, :],
                     preferred_element_type=f32) + b_ref[3:4, :]
    o_ref[...] = jax.nn.sigmoid(logits).astype(o_ref.dtype)


# ---------------- wrapper ---------------------------------------------------
@partial(jax.jit, static_argnames=("num_judges",))
def edtcn_fused_forward(feats_avg, w_packed, b_packed, *, num_judges):
    """feats_avg: (n, C0, T) float32 in NCT (PyTorch Conv1d layout).
    Returns (n, num_judges) probabilities (column j = judge j)."""
    n = feats_avg.shape[0]
    nb = ((max(n, 8) + 7) // 8) * 8          # pad batch to a sublane multiple
    nr = nb * T
    lw = w_packed.shape[1]

    # Host-side prep: NCT -> NTC, flatten, and ONE zero pad that provides both
    # the conv1 "same" padding (1 row each end) and the batch padding rows.
    x = jnp.transpose(feats_avg, (0, 2, 1)).astype(jnp.float32)
    x = x.reshape(n * T, C0)
    x = jnp.pad(x, ((1, 1 + (nb - n) * T), (0, 0)))          # (nr + 2, C0)

    out = pl.pallas_call(
        _fused_edtcn_kernel,
        out_shape=jax.ShapeDtypeStruct((nb, lw), jnp.float32),
        grid_spec=pltpu.PrefetchScalarGridSpec(
            num_scalar_prefetch=0,
            grid=(1,),                       # everything fused into one step
            in_specs=[
                pl.BlockSpec((nr + 2, C0), lambda i: (0, 0)),
                pl.BlockSpec(w_packed.shape, lambda i: (0, 0)),
                pl.BlockSpec(b_packed.shape, lambda i: (0, 0)),
            ],
            out_specs=pl.BlockSpec((nb, lw), lambda i: (0, 0)),
            scratch_shapes=[
                pltpu.VMEM((MARGIN + nr + MARGIN, lw), jnp.float32),
                pltpu.VMEM((nb * T1, lw), jnp.float32),
            ]),
        compiler_params=pltpu.CompilerParams(
            dimension_semantics=("arbitrary",),
            vmem_limit_bytes=32 * 1024 * 1024),
    )(x, w_packed, b_packed)
    return out[:n, :num_judges]


# ---------------- per-judge parameter init + judge fusion (packing) ---------
def init_encoder_params(key):
    ks = jax.random.split(key, 8)
    s = 0.1
    return (
        s * jax.random.normal(ks[0], (K, C0, C1), jnp.float32),
        s * jax.random.normal(ks[1], (1, C1), jnp.float32),
        s * jax.random.normal(ks[2], (K, C1, C2), jnp.float32),
        s * jax.random.normal(ks[3], (1, C2), jnp.float32),
        s * jax.random.normal(ks[4], (T2, C2, H), jnp.float32),
        s * jax.random.normal(ks[5], (1, H), jnp.float32),
        s * jax.random.normal(ks[6], (H, 1), jnp.float32),
        s * jax.random.normal(ks[7], (1, 1), jnp.float32),
    )


def pack_judges(param_list):
    """Pack J per-judge parameter sets into one bf16 weight slab + f32 biases.

    Every layer width is zero-padded to a common lane width LW (>=128) and the
    judges occupy disjoint lane blocks (block-diagonal weights), so the kernel
    is a fixed sequence of lane-dense (rows, LW) x (LW, LW) matmuls.
    # TODO(synk): block-diag packing is O(J^2); for large num_judges switch to
    # a judge-group grid axis (128-lane groups, marked "parallel") instead.
    """
    J = len(param_list)
    jc1, jc2, jh = J * C1, J * C2, J * H
    lw = max(OUT_LANES, ((max(jc1, jc2, jh) + 127) // 128) * 128)
    assert J <= lw

    w1 = jnp.zeros((K, C0, lw), jnp.float32)
    w2 = jnp.zeros((K, lw, lw), jnp.float32)
    w3 = jnp.zeros((T2, lw, lw), jnp.float32)
    w4 = jnp.zeros((lw, lw), jnp.float32)
    b  = jnp.zeros((4, lw), jnp.float32)
    for j, p in enumerate(param_list):
        w1 = w1.at[:, :, j * C1:(j + 1) * C1].set(p[0])
        w2 = w2.at[:, j * C1:(j + 1) * C1, j * C2:(j + 1) * C2].set(p[2])
        w3 = w3.at[:, j * C2:(j + 1) * C2, j * H:(j + 1) * H].set(p[4])
        w4 = w4.at[j * H:(j + 1) * H, j].set(p[6][:, 0])
        b = b.at[0, j * C1:(j + 1) * C1].set(p[1][0])
        b = b.at[1, j * C2:(j + 1) * C2].set(p[3][0])
        b = b.at[2, j * H:(j + 1) * H].set(p[5][0])
        b = b.at[3, j].set(p[7][0, 0])

    w_packed = jnp.concatenate(
        [w1.reshape(K * C0, lw), w2.reshape(K * lw, lw),
         w3.reshape(T2 * lw, lw), w4], axis=0).astype(jnp.bfloat16)
    return w_packed, b


class Evaluator:
    """Mirror of the PyTorch Evaluator: single encoder or a list of judges.

    All judges are evaluated by ONE fused pallas_call (weights packed along
    the lane axis), instead of one kernel launch per judge."""

    def __init__(self, model_type='single', num_judges=None,
                 key=jax.random.PRNGKey(42)):
        self.model_type = model_type
        if model_type == 'single':
            self.raw_params = [init_encoder_params(key)]
        else:
            assert num_judges is not None, 'num_judges is required in Multi'
            keys = jax.random.split(key, num_judges)
            self.raw_params = [init_encoder_params(k) for k in keys]
        self.num_judges = len(self.raw_params)
        self.w_packed, self.b_packed = pack_judges(self.raw_params)

    def __call__(self, feats_avg):
        probs = edtcn_fused_forward(feats_avg, self.w_packed, self.b_packed,
                                    num_judges=self.num_judges)   # (N, J)
        if self.model_type == 'single':
            return probs[:, :1]
        return [probs[:, j:j + 1] for j in range(self.num_judges)]


# ---------------- pure-JAX reference (correctness check, per judge) ---------
def edtcn_reference(feats_avg, params):
    w1, b1, w2, b2, w3, b3, w4, b4 = params
    x = jnp.transpose(feats_avg, (0, 2, 1)).astype(jnp.float32)
    xp = jnp.pad(x, ((0, 0), (PAD, PAD), (0, 0)))
    h1 = sum(jnp.einsum('ntc,cd->ntd', xp[:, k:k + T, :], w1[k])
             for k in range(K)) + b1
    h1 = jax.nn.relu(h1)
    h1p = jnp.maximum(h1[:, 0::2, :], h1[:, 1::2, :])
    x2 = jnp.pad(h1p, ((0, 0), (PAD, PAD), (0, 0)))
    h2 = sum(jnp.einsum('ntc,cd->ntd', x2[:, k:k + T1, :], w2[k])
             for k in range(K)) + b2
    h2 = jax.nn.relu(h2)
    h2p = jnp.maximum(h2[:, 0::2, :], h2[:, 1::2, :])
    h3 = sum(jnp.einsum('nc,ch->nh', h2p[:, t, :], w3[t])
             for t in range(T2)) + b3
    h3 = jax.nn.relu(h3)
    return jax.nn.sigmoid(h3 @ w4 + b4)


if __name__ == "__main__":
    key = jax.random.PRNGKey(0)
    feats_avg = jax.random.normal(key, (N, C0, T), jnp.float32)   # NCT

    # Tolerances account for bf16 MXU operands (f32 reference).
    RTOL, ATOL = 1e-2, 2e-3

    # single-judge path (whole forward pass runs in one Pallas kernel)
    model = Evaluator('single', key=jax.random.PRNGKey(42))
    probs = model(feats_avg)
    jax.block_until_ready(probs)
    ref = edtcn_reference(feats_avg, model.raw_params[0])
    assert probs.shape == (N, 1)
    assert jnp.allclose(probs, ref, rtol=RTOL, atol=ATOL)

    # multi-judge path: still ONE pallas_call, judges fused along lanes
    multi = Evaluator('multi', num_judges=3, key=jax.random.PRNGKey(7))
    mprobs = multi(feats_avg)
    jax.block_until_ready(mprobs)
    assert len(mprobs) == 3 and all(p.shape == (N, 1) for p in mprobs)
    for j in range(3):
        refj = edtcn_reference(feats_avg, multi.raw_params[j])
        assert jnp.allclose(mprobs[j], refj, rtol=RTOL, atol=ATOL)

    print("KERNEL_OK")
</pallas_src>

<mosaic_0001>
module attributes {stable_mosaic.version = 11 : i64} {
  func.func @_fused_edtcn_kernel(%arg0: i32, %arg1: memref<66x32xf32, #tpu.memory_space<vmem>>, %arg2: memref<864x128xbf16, #tpu.memory_space<vmem>>, %arg3: memref<4x128xf32, #tpu.memory_space<vmem>>, %arg4: memref<8x128xf32, #tpu.memory_space<vmem>>, %arg5: memref<80x128xf32, #tpu.memory_space<vmem>>, %arg6: memref<32x128xf32, #tpu.memory_space<vmem>>) attributes {dimension_semantics = [#tpu.dimension_semantics<arbitrary>], iteration_bounds = array<i64: 1>, scalar_prefetch = 0 : i64, scratch_operands = 2 : i64, tpu.core_type = #tpu.core_type<tc>, window_params = [{pipeline_mode = #tpu.pipeline_mode<synchronous>, transform_indices = @transform_0, window_bounds = array<i64: 66, 32>}, {pipeline_mode = #tpu.pipeline_mode<synchronous>, transform_indices = @transform_1, window_bounds = array<i64: 864, 128>}, {pipeline_mode = #tpu.pipeline_mode<synchronous>, transform_indices = @transform_2, window_bounds = array<i64: 4, 128>}, {pipeline_mode = #tpu.pipeline_mode<synchronous>, transform_indices = @transform_3, window_bounds = array<i64: 8, 128>}]} {
    %0 = tpu.iota {dimensions = array<i32: 0>} : vector<64x32xi32>
    %c8_i32 = arith.constant 8 : i32
    %c0_i32 = arith.constant 0 : i32
    %1 = arith.cmpi eq, %c8_i32, %c0_i32 : i32
    %c1_i32 = arith.constant 1 : i32
    %2 = arith.select %1, %c1_i32, %c8_i32 : i32
    %3 = vector.broadcast %2 : i32 to vector<64x32xi32>
    %4 = arith.remsi %0, %3 : vector<64x32xi32>
    %c0_i32_0 = arith.constant 0 : i32
    %5 = vector.broadcast %c0_i32_0 : i32 to vector<64x32xi32>
    %6 = arith.cmpi ne, %4, %5 : vector<64x32xi32>
    %c0_i32_1 = arith.constant 0 : i32
    %7 = vector.broadcast %c0_i32_1 : i32 to vector<64x32xi32>
    %8 = arith.cmpi slt, %4, %7 : vector<64x32xi32>
    %c0_i32_2 = arith.constant 0 : i32
    %9 = arith.cmpi slt, %2, %c0_i32_2 : i32
    %10 = vector.broadcast %9 : i1 to vector<64x32xi1>
    %11 = vector.broadcast %10 : vector<64x32xi1> to vector<64x32xi1>
    %12 = arith.xori %8, %11 : vector<64x32xi1>
    %13 = arith.andi %12, %6 : vector<64x32xi1>
    %14 = vector.broadcast %2 : i32 to vector<64x32xi32>
    %15 = arith.addi %4, %14 : vector<64x32xi32>
    %16 = arith.select %13, %15, %4 : vector<64x32xi1>, vector<64x32xi32>
    %c0_i32_3 = arith.constant 0 : i32
    %17 = vector.broadcast %c0_i32_3 : i32 to vector<64x32xi32>
    %18 = arith.cmpi ne, %16, %17 : vector<64x32xi32>
    %c0 = arith.constant 0 : index
    %c0_4 = arith.constant 0 : index
    %19 = vector.load %arg1[%c0, %c0_4] : memref<66x32xf32, #tpu.memory_space<vmem>>, vector<64x32xf32>
    %cst = arith.constant 0.000000e+00 : f32
    %20 = vector.broadcast %cst : f32 to vector<64x32xf32>
    %21 = arith.select %18, %19, %20 : vector<64x32xi1>, vector<64x32xf32>
    %c1 = arith.constant 1 : index
    %c0_5 = arith.constant 0 : index
    %22 = vector.load %arg1[%c1, %c0_5] : memref<66x32xf32, #tpu.memory_space<vmem>>, vector<64x32xf32>
    %c7_i32 = arith.constant 7 : i32
    %23 = vector.broadcast %c7_i32 : i32 to vector<64x32xi32>
    %24 = arith.cmpi ne, %16, %23 : vector<64x32xi32>
    %c2 = arith.constant 2 : index
    %c0_6 = arith.constant 0 : index
    %25 = vector.load %arg1[%c2, %c0_6] : memref<66x32xf32, #tpu.memory_space<vmem>>, vector<64x32xf32>
    %cst_7 = arith.constant 0.000000e+00 : f32
    %26 = vector.broadcast %cst_7 : f32 to vector<64x32xf32>
    %27 = arith.select %24, %25, %26 : vector<64x32xi1>, vector<64x32xf32>
    %28 = arith.truncf %21 : vector<64x32xf32> to vector<64x32xbf16>
    %c0_8 = arith.constant 0 : index
    %c0_9 = arith.constant 0 : index
    %29 = vector.load %arg2[%c0_8, %c0_9] : memref<864x128xbf16, #tpu.memory_space<vmem>>, vector<32x128xbf16>
    %cst_10 = arith.constant dense<0.000000e+00> : vector<64x128xf32>
    %30 = tpu.matmul %28, %29, %cst_10 {dimension_numbers = #tpu.dot_dimension_numbers<[1], [0], [0], [1], [0, 0, 1, 1], [], []>} : vector<64x32xbf16>, vector<32x128xbf16>, vector<64x128xf32> -> vector<64x128xf32>
    %31 = arith.truncf %22 : vector<64x32xf32> to vector<64x32xbf16>
    %c32 = arith.constant 32 : index
    %c0_11 = arith.constant 0 : index
    %32 = vector.load %arg2[%c32, %c0_11] : memref<864x128xbf16, #tpu.memory_space<vmem>>, vector<32x128xbf16>
    %cst_12 = arith.constant dense<0.000000e+00> : vector<64x128xf32>
    %33 = tpu.matmul %31, %32, %cst_12 {dimension_numbers = #tpu.dot_dimension_numbers<[1], [0], [0], [1], [0, 0, 1, 1], [], []>} : vector<64x32xbf16>, vector<32x128xbf16>, vector<64x128xf32> -> vector<64x128xf32>
    %34 = arith.addf %30, %33 : vector<64x128xf32>
    %35 = arith.truncf %27 : vector<64x32xf32> to vector<64x32xbf16>
    %c64 = arith.constant 64 : index
    %c0_13 = arith.constant 0 : index
    %36 = vector.load %arg2[%c64, %c0_13] : memref<864x128xbf16, #tpu.memory_space<vmem>>, vector<32x128xbf16>
    %cst_14 = arith.constant dense<0.000000e+00> : vector<64x128xf32>
    %37 = tpu.matmul %35, %36, %cst_14 {dimension_numbers = #tpu.dot_dimension_numbers<[1], [0], [0], [1], [0, 0, 1, 1], [], []>} : vector<64x32xbf16>, vector<32x128xbf16>, vector<64x128xf32> -> vector<64x128xf32>
    %38 = arith.addf %34, %37 : vector<64x128xf32>
    %c0_15 = arith.constant 0 : index
    %c0_16 = arith.constant 0 : index
    %39 = vector.load %arg3[%c0_15, %c0_16] : memref<4x128xf32, #tpu.memory_space<vmem>>, vector<1x128xf32>
    %40 = vector.broadcast %39 : vector<1x128xf32> to vector<64x128xf32>
    %41 = arith.addf %38, %40 : vector<64x128xf32>
    %cst_17 = arith.constant 0.000000e+00 : f32
    %42 = vector.broadcast %cst_17 : f32 to vector<64x128xf32>
    %43 = arith.maximumf %41, %42 : vector<64x128xf32>
    %c8 = arith.constant 8 : index
    %c0_18 = arith.constant 0 : index
    %44 = vector.load %arg5[%c8, %c0_18] : memref<80x128xf32, #tpu.memory_space<vmem>>, vector<64x128xf32>
    tpu.vector_store %arg5[%c8, %c0_18], %43 {strides = array<i32>} : memref<80x128xf32, #tpu.memory_space<vmem>>, vector<64x128xf32>,
    %45 = tpu.iota {dimensions = array<i32: 0>} : vector<32x128xi32>
    %c4_i32 = arith.constant 4 : i32
    %c0_i32_19 = arith.constant 0 : i32
    %46 = arith.cmpi eq, %c4_i32, %c0_i32_19 : i32
    %c1_i32_20 = arith.constant 1 : i32
    %47 = arith.select %46, %c1_i32_20, %c4_i32 : i32
    %48 = vector.broadcast %47 : i32 to vector<32x128xi32>
    %49 = arith.remsi %45, %48 : vector<32x128xi32>
    %c0_i32_21 = arith.constant 0 : i32
    %50 = vector.broadcast %c0_i32_21 : i32 to vector<32x128xi32>
    %51 = arith.cmpi ne, %49, %50 : vector<32x128xi32>
    %c0_i32_22 = arith.constant 0 : i32
    %52 = vector.broadcast %c0_i32_22 : i32 to vector<32x128xi32>
    %53 = arith.cmpi slt, %49, %52 : vector<32x128xi32>
    %c0_i32_23 = arith.constant 0 : i32
    %54 = arith.cmpi slt, %47, %c0_i32_23 : i32
    %55 = vector.broadcast %54 : i1 to vector<32x128xi1>
    %56 = vector.broadcast %55 : vector<32x128xi1> to vector<32x128xi1>
    %57 = arith.xori %53, %56 : vector<32x128xi1>
    %58 = arith.andi %57, %51 : vector<32x128xi1>
    %59 = vector.broadcast %47 : i32 to vector<32x128xi32>
    %60 = arith.addi %49, %59 : vector<32x128xi32>
    %61 = arith.select %58, %60, %49 : vector<32x128xi1>, vector<32x128xi32>
    %c0_i32_24 = arith.constant 0 : i32
    %62 = vector.broadcast %c0_i32_24 : i32 to vector<32x128xi32>
    %63 = arith.cmpi ne, %61, %62 : vector<32x128xi32>
    %c3_i32 = arith.constant 3 : i32
    %64 = vector.broadcast %c3_i32 : i32 to vector<32x128xi32>
    %65 = arith.cmpi ne, %61, %64 : vector<32x128xi32>
    %cst_25 = arith.constant 0.000000e+00 : f32
    %66 = vector.broadcast %cst_25 : f32 to vector<32x128xf32>
    %c6 = arith.constant 6 : index
    %c0_26 = arith.constant 0 : index
    %67 = tpu.strided_load %arg5[%c6, %c0_26] {strides = array<i32: 2, 1>} : memref<80x128xf32, #tpu.memory_space<vmem>>, vector<32x128xf32>
    %c7 = arith.constant 7 : index
    %c0_27 = arith.constant 0 : index
    %68 = tpu.strided_load %arg5[%c7, %c0_27] {strides = array<i32: 2, 1>} : memref<80x128xf32, #tpu.memory_space<vmem>>, vector<32x128xf32>
    %69 = arith.maximumf %67, %68 : vector<32x128xf32>
    %cst_28 = arith.constant 0.000000e+00 : f32
    %70 = vector.broadcast %cst_28 : f32 to vector<32x128xf32>
    %71 = arith.select %63, %69, %70 : vector<32x128xi1>, vector<32x128xf32>
    %72 = arith.truncf %71 : vector<32x128xf32> to vector<32x128xbf16>
    %c96 = arith.constant 96 : index
    %c0_29 = arith.constant 0 : index
    %73 = vector.load %arg2[%c96, %c0_29] : memref<864x128xbf16, #tpu.memory_space<vmem>>, vector<128x128xbf16>
    %cst_30 = arith.constant dense<0.000000e+00> : vector<32x128xf32>
    %74 = tpu.matmul %72, %73, %cst_30 {dimension_numbers = #tpu.dot_dimension_numbers<[1], [0], [0], [1], [0, 0, 1, 1], [], []>} : vector<32x128xbf16>, vector<128x128xbf16>, vector<32x128xf32> -> vector<32x128xf32>
    %75 = arith.addf %66, %74 : vector<32x128xf32>
    %c8_31 = arith.constant 8 : index
    %c0_32 = arith.constant 0 : index
    %76 = tpu.strided_load %arg5[%c8_31, %c0_32] {strides = array<i32: 2, 1>} : memref<80x128xf32, #tpu.memory_space<vmem>>, vector<32x128xf32>
    %c9 = arith.constant 9 : index
    %c0_33 = arith.constant 0 : index
    %77 = tpu.strided_load %arg5[%c9, %c0_33] {strides = array<i32: 2, 1>} : memref<80x128xf32, #tpu.memory_space<vmem>>, vector<32x128xf32>
    %78 = arith.maximumf %76, %77 : vector<32x128xf32>
    %79 = arith.truncf %78 : vector<32x128xf32> to vector<32x128xbf16>
    %c224 = arith.constant 224 : index
    %c0_34 = arith.constant 0 : index
    %80 = vector.load %arg2[%c224, %c0_34] : memref<864x128xbf16, #tpu.memory_space<vmem>>, vector<128x128xbf16>
    %cst_35 = arith.constant dense<0.000000e+00> : vector<32x128xf32>
    %81 = tpu.matmul %79, %80, %cst_35 {dimension_numbers = #tpu.dot_dimension_numbers<[1], [0], [0], [1], [0, 0, 1, 1], [], []>} : vector<32x128xbf16>, vector<128x128xbf16>, vector<32x128xf32> -> vector<32x128xf32>
    %82 = arith.addf %75, %81 : vector<32x128xf32>
    %c10 = arith.constant 10 : index
    %c0_36 = arith.constant 0 : index
    %83 = tpu.strided_load %arg5[%c10, %c0_36] {strides = array<i32: 2, 1>} : memref<80x128xf32, #tpu.memory_space<vmem>>, vector<32x128xf32>
    %c11 = arith.constant 11 : index
    %c0_37 = arith.constant 0 : index
    %84 = tpu.strided_load %arg5[%c11, %c0_37] {strides = array<i32: 2, 1>} : memref<80x128xf32, #tpu.memory_space<vmem>>, vector<32x128xf32>
    %85 = arith.maximumf %83, %84 : vector<32x128xf32>
    %cst_38 = arith.constant 0.000000e+00 : f32
    %86 = vector.broadcast %cst_38 : f32 to vector<32x128xf32>
    %87 = arith.select %65, %85, %86 : vector<32x128xi1>, vector<32x128xf32>
    %88 = arith.truncf %87 : vector<32x128xf32> to vector<32x128xbf16>
    %c352 = arith.constant 352 : index
    %c0_39 = arith.constant 0 : index
    %89 = vector.load %arg2[%c352, %c0_39] : memref<864x128xbf16, #tpu.memory_space<vmem>>, vector<128x128xbf16>
    %cst_40 = arith.constant dense<0.000000e+00> : vector<32x128xf32>
    %90 = tpu.matmul %88, %89, %cst_40 {dimension_numbers = #tpu.dot_dimension_numbers<[1], [0], [0], [1], [0, 0, 1, 1], [], []>} : vector<32x128xbf16>, vector<128x128xbf16>, vector<32x128xf32> -> vector<32x128xf32>
    %91 = arith.addf %82, %90 : vector<32x128xf32>
    %c1_41 = arith.constant 1 : index
    %c0_42 = arith.constant 0 : index
    %92 = vector.load %arg3[%c1_41, %c0_42] : memref<4x128xf32, #tpu.memory_space<vmem>>, vector<1x128xf32>
    %93 = vector.broadcast %92 : vector<1x128xf32> to vector<32x128xf32>
    %94 = arith.addf %91, %93 : vector<32x128xf32>
    %cst_43 = arith.constant 0.000000e+00 : f32
    %95 = vector.broadcast %cst_43 : f32 to vector<32x128xf32>
    %96 = arith.maximumf %94, %95 : vector<32x128xf32>
    %c0_44 = arith.constant 0 : index
    %c0_45 = arith.constant 0 : index
    %97 = vector.load %arg6[%c0_44, %c0_45] : memref<32x128xf32, #tpu.memory_space<vmem>>, vector<32x128xf32>
    tpu.vector_store %arg6[%c0_44, %c0_45], %96 {strides = array<i32>} : memref<32x128xf32, #tpu.memory_space<vmem>>, vector<32x128xf32>,
    %cst_46 = arith.constant 0.000000e+00 : f32
    %98 = vector.broadcast %cst_46 : f32 to vector<8x128xf32>
    %c0_47 = arith.constant 0 : index
    %c0_48 = arith.constant 0 : index
    %99 = tpu.strided_load %arg6[%c0_47, %c0_48] {strides = array<i32: 4, 1>} : memref<32x128xf32, #tpu.memory_space<vmem>>, vector<8x128xf32>
    %c1_49 = arith.constant 1 : index
    %c0_50 = arith.constant 0 : index
    %100 = tpu.strided_load %arg6[%c1_49, %c0_50] {strides = array<i32: 4, 1>} : memref<32x128xf32, #tpu.memory_space<vmem>>, vector<8x128xf32>
    %101 = arith.maximumf %99, %100 : vector<8x128xf32>
    %102 = arith.truncf %101 : vector<8x128xf32> to vector<8x128xbf16>
    %c480 = arith.constant 480 : index
    %c0_51 = arith.constant 0 : index
    %103 = vector.load %arg2[%c480, %c0_51] : memref<864x128xbf16, #tpu.memory_space<vmem>>, vector<128x128xbf16>
    %cst_52 = arith.constant dense<0.000000e+00> : vector<8x128xf32>
    %104 = tpu.matmul %102, %103, %cst_52 {dimension_numbers = #tpu.dot_dimension_numbers<[1], [0], [0], [1], [0, 0, 1, 1], [], []>} : vector<8x128xbf16>, vector<128x128xbf16>, vector<8x128xf32> -> vector<8x128xf32>
    %105 = arith.addf %98, %104 : vector<8x128xf32>
    %c2_53 = arith.constant 2 : index
    %c0_54 = arith.constant 0 : index
    %106 = tpu.strided_load %arg6[%c2_53, %c0_54] {strides = array<i32: 4, 1>} : memref<32x128xf32, #tpu.memory_space<vmem>>, vector<8x128xf32>
    %c3 = arith.constant 3 : index
    %c0_55 = arith.constant 0 : index
    %107 = tpu.strided_load %arg6[%c3, %c0_55] {strides = array<i32: 4, 1>} : memref<32x128xf32, #tpu.memory_space<vmem>>, vector<8x128xf32>
    %108 = arith.maximumf %106, %107 : vector<8x128xf32>
    %109 = arith.truncf %108 : vector<8x128xf32> to vector<8x128xbf16>
    %c608 = arith.constant 608 : index
    %c0_56 = arith.constant 0 : index
    %110 = vector.load %arg2[%c608, %c0_56] : memref<864x128xbf16, #tpu.memory_space<vmem>>, vector<128x128xbf16>
    %cst_57 = arith.constant dense<0.000000e+00> : vector<8x128xf32>
    %111 = tpu.matmul %109, %110, %cst_57 {dimension_numbers = #tpu.dot_dimension_numbers<[1], [0], [0], [1], [0, 0, 1, 1], [], []>} : vector<8x128xbf16>, vector<128x128xbf16>, vector<8x128xf32> -> vector<8x128xf32>
    %112 = arith.addf %105, %111 : vector<8x128xf32>
    %c2_58 = arith.constant 2 : index
    %c0_59 = arith.constant 0 : index
    %113 = vector.load %arg3[%c2_58, %c0_59] : memref<4x128xf32, #tpu.memory_space<vmem>>, vector<1x128xf32>
    %114 = vector.broadcast %113 : vector<1x128xf32> to vector<8x128xf32>
    %115 = arith.addf %112, %114 : vector<8x128xf32>
    %cst_60 = arith.constant 0.000000e+00 : f32
    %116 = vector.broadcast %cst_60 : f32 to vector<8x128xf32>
    %117 = arith.maximumf %115, %116 : vector<8x128xf32>
    %118 = arith.truncf %117 : vector<8x128xf32> to vector<8x128xbf16>
    %c736 = arith.constant 736 : index
    %c0_61 = arith.constant 0 : index
    %119 = vector.load %arg2[%c736, %c0_61] : memref<864x128xbf16, #tpu.memory_space<vmem>>, vector<128x128xbf16>
    %cst_62 = arith.constant dense<0.000000e+00> : vector<8x128xf32>
    %120 = tpu.matmul %118, %119, %cst_62 {dimension_numbers = #tpu.dot_dimension_numbers<[1], [0], [0], [1], [0, 0, 1, 1], [], []>} : vector<8x128xbf16>, vector<128x128xbf16>, vector<8x128xf32> -> vector<8x128xf32>
    %c3_63 = arith.constant 3 : index
    %c0_64 = arith.constant 0 : index
    %121 = vector.load %arg3[%c3_63, %c0_64] : memref<4x128xf32, #tpu.memory_space<vmem>>, vector<1x128xf32>
    %122 = vector.broadcast %121 : vector<1x128xf32> to vector<8x128xf32>
    %123 = arith.addf %120, %122 : vector<8x128xf32>
    %124 = arith.negf %123 : vector<8x128xf32>
    %125 = math.exp %124 : vector<8x128xf32>
    %cst_65 = arith.constant 1.000000e+00 : f32
    %126 = vector.broadcast %cst_65 : f32 to vector<8x128xf32>
    %127 = arith.addf %126, %125 : vector<8x128xf32>
    %128 = arith.divf %126, %127 : vector<8x128xf32>
    %c0_66 = arith.constant 0 : index
    %c0_67 = arith.constant 0 : index
    %129 = vector.load %arg4[%c0_66, %c0_67] : memref<8x128xf32, #tpu.memory_space<vmem>>, vector<8x128xf32>
    tpu.vector_store %arg4[%c0_66, %c0_67], %128 {strides = array<i32>} : memref<8x128xf32, #tpu.memory_space<vmem>>, vector<8x128xf32>,
    return
  }
  func.func @transform_0(%arg0: i32) -> (i32, i32) {
    %c0_i32 = arith.constant 0 : i32
    %c0_i32_0 = arith.constant 0 : i32
    %c0_i32_1 = arith.constant 0 : i32
    return %c0_i32, %c0_i32_0 : i32, i32
  }
  func.func @transform_1(%arg0: i32) -> (i32, i32) {
    %c0_i32 = arith.constant 0 : i32
    %c0_i32_0 = arith.constant 0 : i32
    %c0_i32_1 = arith.constant 0 : i32
    return %c0_i32, %c0_i32_0 : i32, i32
  }
  func.func @transform_2(%arg0: i32) -> (i32, i32) {
    %c0_i32 = arith.constant 0 : i32
    %c0_i32_0 = arith.constant 0 : i32
    %c0_i32_1 = arith.constant 0 : i32
    return %c0_i32, %c0_i32_0 : i32, i32
  }
  func.func @transform_3(%arg0: i32) -> (i32, i32) {
    %c0_i32 = arith.constant 0 : i32
    %c0_i32_0 = arith.constant 0 : i32
    %c0_i32_1 = arith.constant 0 : i32
    return %c0_i32, %c0_i32_0 : i32, i32
  }
}

</mosaic_0001>

<bundles_post_ra>
// kernel: edtcn_fused_forward.1
= control target key start
LH: loop header
LB: loop body
LE: loop exit
PB: predicated region body
PF: predicated region fallthrough
CT: control target
= control target key end

     0   :  { %8 = vsyncpa [#allocation5], 0  ;;  %s1760_s12 = smov [#allocation4]   ;;  %s2075_s0 = inlined_call_operand.vmem [shape: f32[66,32], index: 0, kind: input, shape index: {}]   ;;  %s2076_s1 = inlined_call_operand.hbm [shape: bf16[864,128], index: 1, kind: input, shape index: {}]   ;;  %s2077_s2 = inlined_call_operand.vmem [shape: f32[4,128], index: 2, kind: input, shape index: {}]   ;;  %s2078_s3 = inlined_call_operand.vmem [shape: f32[8,128], index: 3, kind: output, shape index: {}]  }
   0x1   :  { %s16_s13 = sshll.u32 %s1760_s12, 4  ;;  %s17_s13 = int_to_ptr.vmem [resolvable:$true] %s16_s13 }
   0x2   :  { %s1746_s14 = scalar_lea.vmem %s17_s13, 6912  ;;  %p1751_p1 = scmp.lt.s32.totalorder %s17_s13, %s17_s13 }
   0x3   :  { %p1747_p0 = scmp.ne.s32.totalorder %s17_s13, %s1746_s14  ;;  %p1752_p2 = scmp.lt.s32.totalorder %s1746_s14, %s1746_s14 }
   0x5   :  { %p1753_p3 = por %p1752_p2, %p1751_p1 }
   0x7   :  { %p1754_p4 = pnand %p1753_p3, %p1747_p0 }
   0x9   :  { %1757 = shalt.err (!%p1754_p4)
}
   0xa   :  { %s1761_s15 = smov 64   ;;  %s1762_s16 = smov 4  }
   0xb   :  { %22 = dma.hbm_to_vmem [thread:$0]  %s2076_s1, 6912, %s17_s13, [#allocation5], %s1761_s15, %s1761_s15, %s1762_s16  }
   0xc   :  { %1758 = dma.done.wait [#allocation5], 6912  }
   0xd   :  { %1759 = vsyncadd [#allocation5], 4294960384  ;;  %v29_v0 = vlaneseq  ;;  %vm218_vm0 = vcmask 261120   ;;  %v1680_v14 = vld [vmem:[#allocation4 + $0x18] sm:$0xff]   ;;  %v1681_v16 = vld [vmem:[#allocation4 + $0x10] sm:$0xff]  }
   0xe   :  { %1515 = vmatprep.subr.bf16.mxu0 %v1680_v14  ;;  %1671 = vmatprep.subr.bf16.mxu1 %v1680_v14  ;;  %v158_v18 = vld [vmem:[%s2075_s0 + $0x1] sm:$0xff]  ;;  %v159_v19 = vld [vmem:[%s2075_s0 + $0x9] sm:$0xff]  ;;  %v160_v26 = vld [vmem:[%s2075_s0 + $0x11] sm:$0xff] }
   0xf   :  { %v1788_v1 = vshrl.u32 %v29_v0, 7  ;;  %v162_v20 = vld [vmem:[%s2075_s0 + $0x21] sm:$0xff]  ;;  %1516 = vmatpush3.bf16.msra.mxu0 %v1680_v14  ;;  %1673 = vmatpush3.bf16.msra.mxu1 %v1680_v14  ;;  %v198_v24 = vpack.c.bf16 %v159_v19, %v158_v18  ;;  %v163_v25 = vld [vmem:[%s2075_s0 + $0x29] sm:$0xff]  ;;  %v161_v27 = vld [vmem:[%s2075_s0 + $0x19] sm:$0xff] }
  0x10   :  { %1517 = vmatprep.subr.bf16.mxu0 %v1681_v16  ;;  %1672 = vmatprep.subr.bf16.mxu1 %v1681_v16  ;;  %v200_v31 = vpack.c.bf16 %v163_v25, %v162_v20  ;;  %v164_v32 = vld [vmem:[%s2075_s0 + $0x31] sm:$0xff]  ;;  %v165_v33 = vld [vmem:[%s2075_s0 + $0x39] sm:$0xff]  ;;  %v199_v38 = vpack.c.bf16 %v161_v27, %v160_v26  ;;  %v143_v48 = vld [vmem:[%s2075_s0 + $0x8] sm:$0xff] }
  0x11   :  { %v1791_v2 = vadd.s32 8, %v1788_v1  ;;  %v42_v3 = vand.u32 7, %v1788_v1  ;;  %v1795_v4 = vadd.s32 16, %v1788_v1  ;;  %v1798_v5 = vadd.s32 24, %v1788_v1  ;;  %1519 = vmatprep.mubr.msk.bf16.mxu0 %vm218_vm0, %v198_v24  ;;  %v1682_v36 = vld [vmem:[#allocation4 + $0x8] sm:$0xff]   ;;  %v1684_v42 = vld [vmem:[#allocation4] sm:$0xff]  }
  0x12   :  { %v34_v6 = vadd.s32 32, %v1788_v1  ;;  %v35_v7 = vadd.s32 40, %v1788_v1  ;;  %v36_v8 = vadd.s32 48, %v1788_v1  ;;  %v1804_v9 = vadd.s32 56, %v1788_v1  ;;  %1523 = vmatprep.mubr.msk.bf16.mxu1 %vm218_vm0, %v200_v31  ;;  %v1683_v40 = vld [vmem:[#allocation4 + $0x28] sm:$0xff]   ;;  %v1685_v44 = vld [vmem:[#allocation4 + $0x20] sm:$0xff]  }
  0x13   :  { %v49_v10 = vand.u32 7, %v1791_v2  ;;  %vm1807_vm1 = vcmp.ne.s32.totalorder %v42_v3, 0  ;;  %vm1811_vm2 = vcmp.ne.s32.totalorder %v42_v3, 7  ;;  %v56_v13 = vand.u32 7, %v1795_v4  ;;  %1518 = vmatpush3.bf16.msra.mxu0 %v1681_v16  ;;  %1674 = vmatpush3.bf16.msra.mxu1 %v1681_v16  ;;  %v142_v45 = vld [vmem:[%s2075_s0] sm:$0xff]  ;;  %v175_v51 = vld [vmem:[%s2075_s0 + $0xa] sm:$0xff] }
  0x14   :  { %v63_v15 = vand.u32 7, %v1798_v5  ;;  %v70_v30 = vand.u32 7, %v34_v6  ;;  %v77_v34 = vand.u32 7, %v35_v7  ;;  %v84_v35 = vand.u32 7, %v36_v8  ;;  %1527 = vmatprep.subr.bf16.mxu1 %v1682_v36  ;;  %1539 = vmatprep.subr.bf16.mxu0 %v1683_v40  ;;  %v174_v50 = vld [vmem:[%s2075_s0 + $0x2] sm:$0xff]  ;;  %v144_v57 = vld [vmem:[%s2075_s0 + $0x10] sm:$0xff] }
  0x15   :  { %vm1817_vm3 = vcmp.ne.s32.totalorder %v49_v10, 0  ;;  %vm1830_vm4 = vcmp.ne.s32.totalorder %v49_v10, 7  ;;  %vm1834_vm5 = vcmp.ne.s32.totalorder %v56_v13, 0  ;;  %vm1851_vm7 = vcmp.ne.s32.totalorder %v56_v13, 7  ;;  %v145_v58 = vld [vmem:[%s2075_s0 + $0x18] sm:$0xff]  ;;  %v146_v3 = vld [vmem:[%s2075_s0 + $0x20] sm:$0xff] }
  0x16   :  { %vm1838_vm6 = vcmp.ne.s32.totalorder %v63_v15, 0  ;;  %vm1855_vm8 = vcmp.ne.s32.totalorder %v63_v15, 7  ;;  %vm1866_vm9 = vcmp.ne.s32.totalorder %v70_v30, 0  ;;  %v201_v39 = vpack.c.bf16 %v165_v33, %v164_v32  ;;  %1520 = vmatmul.mubr.msk.bf16.vlgmr.msra.gmra.mxu0 %vm218_vm0, %v199_v38  ;;  %v176_v59 = vld [vmem:[%s2075_s0 + $0x12] sm:$0xff]  ;;  %v177_v0 = vld [vmem:[%s2075_s0 + $0x1a] sm:$0xff]  ;;  %v147_v6 = vld [vmem:[%s2075_s0 + $0x28] sm:$0xff] }
  0x17   :  { %vm1871_vm10 = vcmp.ne.s32.totalorder %v77_v34, 0  ;;  %vm1875_vm11 = vcmp.ne.s32.totalorder %v70_v30, 7  ;;  %vm1882_vm12 = vcmp.ne.s32.totalorder %v77_v34, 7  ;;  %v91_v47 = vand.u32 7, %v1804_v9  ;;  %1540 = vmatpush3.bf16.msra.mxu0 %v1683_v40  ;;  %v178_v10 = vld [vmem:[%s2075_s0 + $0x22] sm:$0xff]  ;;  %v179_v11 = vld [vmem:[%s2075_s0 + $0x2a] sm:$0xff] }
  0x18   :  { %v150_v49 = vsel %vm1807_vm1, %v142_v45, 0.0  ;;  %vm1898_vm13 = vcmp.ne.s32.totalorder %v84_v35, 0  ;;  %vm1902_vm14 = vcmp.ne.s32.totalorder %v84_v35, 7  ;;  %1524 = vmatmul.mubr.msk.bf16.vlgmr.msra.gmra.mxu1 %vm218_vm0, %v201_v39  ;;  %v151_v54 = vsel %vm1817_vm3, %v143_v48, 0.0  ;;  %1541 = vmatprep.subr.bf16.mxu0 %v1685_v44  ;;  %v148_v12 = vld [vmem:[%s2075_s0 + $0x30] sm:$0xff]  ;;  %v149_v16 = vld [vmem:[%s2075_s0 + $0x38] sm:$0xff] }
  0x19   :  { %v182_v55 = vsel %vm1811_vm2, %v174_v50, 0.0  ;;  %v183_v56 = vsel %vm1830_vm4, %v175_v51, 0.0  ;;  %1528 = vmatpush3.bf16.msra.mxu1 %v1682_v36  ;;  %v190_v60 = vpack.c.bf16 %v151_v54, %v150_v49  ;;  %v152_v62 = vsel %vm1834_vm5, %v144_v57, 0.0  ;;  %v180_v17 = vld [vmem:[%s2075_s0 + $0x32] sm:$0xff]  ;;  %v181_v18 = vld [vmem:[%s2075_s0 + $0x3a] sm:$0xff]  ;;  %v1690_v33 = vld [vmem:[#allocation4 + $0x98] sm:$0xff]  }
  0x1a   :  { %v385_v61 = vpack.c.bf16 %v183_v56, %v182_v55  ;;  %v153_v63 = vsel %vm1838_vm6, %v145_v58, 0.0  ;;  %1529 = vmatprep.subr.bf16.mxu1 %v1684_v42  ;;  %v184_v7 = vsel %vm1851_vm7, %v176_v59, 0.0  ;;  %v185_v8 = vsel %vm1855_vm8, %v177_v0, 0.0  ;;  %v1686_v29 = vld [vmem:[#allocation4 + $0xa8] sm:$0xff]   ;;  %v1688_v31 = vld [vmem:[#allocation4 + $0xa0] sm:$0xff]   ;;  %v1691_v34 = vld [vmem:[#allocation4 + $0x58] sm:$0xff]  }
  0x1b   :  { %v154_v9 = vsel %vm1866_vm9, %v146_v3, 0.0  ;;  %1531 = vmatprep.mubr.msk.bf16.mxu1 %vm218_vm0, %v190_v60  ;;  %v155_v13 = vsel %vm1871_vm10, %v147_v6, 0.0  ;;  %v186_v14 = vsel %vm1875_vm11, %v178_v10, 0.0  ;;  %v187_v15 = vsel %vm1882_vm12, %v179_v11, 0.0  ;;  %1542 = vmatpush3.bf16.msra.mxu0 %v1685_v44  ;;  %v1687_v30 = vld [vmem:[#allocation4 + $0x68] sm:$0xff]   ;;  %v1689_v32 = vld [vmem:[#allocation4 + $0x60] sm:$0xff]  }
  0x1c   :  { %1543 = vmatprep.mubr.msk.bf16.mxu0 %vm218_vm0, %v385_v61  ;;  %v191_v19 = vpack.c.bf16 %v153_v63, %v152_v62  ;;  %v386_v20 = vpack.c.bf16 %v185_v8, %v184_v7  ;;  %v192_v21 = vpack.c.bf16 %v155_v13, %v154_v9  ;;  %vm141_vm15 = vcmp.ne.s32.totalorder %v91_v47, 0  ;;  %1571 = vmatprep.subr.bf16.mxu0 %v1687_v30  ;;  %v1692_v35 = vld [vmem:[#allocation4 + $0x90] sm:$0xff]   ;;  %v1694_v37 = vld [vmem:[#allocation4 + $0x88] sm:$0xff]   ;;  %v1696_v39 = vld [vmem:[#allocation4 + $0x80] sm:$0xff]  }
  0x1d   :  { %1530 = vmatpush3.bf16.msra.mxu1 %v1684_v42  ;;  %v387_v22 = vpack.c.bf16 %v187_v15, %v186_v14  ;;  %v156_v23 = vsel %vm1898_vm13, %v148_v12, 0.0  ;;  %v157_v24 = vsel %vm141_vm15, %v149_v16, 0.0  ;;  %vm173_vm1 = vcmp.ne.s32.totalorder %v91_v47, 7  ;;  %v1693_v36 = vld [vmem:[#allocation4 + $0x50] sm:$0xff]   ;;  %v1695_v38 = vld [vmem:[#allocation4 + $0x48] sm:$0xff]   ;;  %v1697_v40 = vld [vmem:[#allocation4 + $0x40] sm:$0xff]  }
  0x1e   :  { %v188_v25 = vsel %vm1902_vm14, %v180_v17, 0.0  ;;  %v189_v26 = vsel %vm173_vm1, %v181_v18, 0.0  ;;  %1544 = vmatmul.mubr.msk.bf16.vlgmr.msra.gmra.mxu0 %vm218_vm0, %v386_v20  ;;  %v193_v27 = vpack.c.bf16 %v157_v24, %v156_v23  ;;  %1551 = vmatprep.subr.bf16.mxu1 %v1686_v29  ;;  %v1698_v41 = vld [vmem:[#allocation4 + $0x78] sm:$0xff]   ;;  %v1700_v43 = vld [vmem:[#allocation4 + $0x70] sm:$0xff]   ;;  %v1978_v45 = vld [vmem:[#allocation4 + $0xe8] sm:$0xff]   ;;  %vm1764_vm13 = vmmov 0  }
  0x1f   :  { %1547 = vmatprep.mubr.msk.bf16.mxu0 %vm218_vm0, %v387_v22  ;;  %v388_v28 = vpack.c.bf16 %v189_v26, %v188_v25  ;;  %1572 = vmatpush3.bf16.msra.mxu0 %v1687_v30  ;;  %v1699_v42 = vld [vmem:[#allocation4 + $0x38] sm:$0xff]   ;;  %v1701_v44 = vld [vmem:[#allocation4 + $0x30] sm:$0xff]  }
  0x20   :  { %1532 = vmatmul.mubr.msk.bf16.vlgmr.msra.gmra.mxu1 %vm218_vm0, %v191_v19  ;;  %1573 = vmatprep.subr.bf16.mxu0 %v1689_v32  ;;  %v1375_v57 = vld [vmem:[%s2077_s2] ss:$0 sm:$0xff] }
  0x21   :  { %1535 = vmatprep.mubr.msk.bf16.mxu1 %vm218_vm0, %v192_v21  ;;  %1552 = vmatpush3.bf16.msra.mxu1 %v1686_v29 }
  0x22   :  { %1553 = vmatprep.subr.bf16.mxu1 %v1688_v31 }
  0x23   :  { %1574 = vmatpush3.bf16.msra.mxu0 %v1689_v32 }
  0x24   :  { %1575 = vmatprep.subr.bf16.mxu0 %v1691_v34 }
  0x25   :  { %1554 = vmatpush3.bf16.msra.mxu1 %v1688_v31 }
  0x26   :  { %1548 = vmatmul.mubr.msk.bf16.gmra.mxu0 %vm218_vm0, %v388_v28  ;;  %1555 = vmatprep.subr.bf16.mxu1 %v1690_v33 }
  0x27   :  { %1576 = vmatpush3.bf16.msra.mxu0 %v1691_v34 }
  0x28   :  { %1536 = vmatmul.mubr.msk.bf16.gmra.mxu1 %vm218_vm0, %v193_v27  ;;  %1577 = vmatprep.subr.bf16.mxu0 %v1693_v36 }
  0x29   :  { %1556 = vmatpush3.bf16.msra.mxu1 %v1690_v33 }
  0x2a   :  { %1557 = vmatprep.subr.bf16.mxu1 %v1692_v35 }
  0x2b   :  { %1578 = vmatpush3.bf16.msra.mxu0 %v1693_v36 }
  0x2c   :  { %1579 = vmatprep.subr.bf16.mxu0 %v1695_v38 }
  0x2d   :  { %1558 = vmatpush3.bf16.msra.mxu1 %v1692_v35 }
  0x2e   :  { %1559 = vmatprep.subr.bf16.mxu1 %v1694_v37 }
  0x2f   :  { %1580 = vmatpush3.bf16.msra.mxu0 %v1695_v38 }
  0x30   :  { %1581 = vmatprep.subr.bf16.mxu0 %v1697_v40 }
  0x31   :  { %1560 = vmatpush3.bf16.msra.mxu1 %v1694_v37  ;;  %v523_v37 = vand.u32 3, %v1788_v1  ;;  %v537_v1 = vand.u32 3, %v1795_v4  ;;  %v1712_v4 = vld [vmem:[#allocation4 + $0x160] sm:$0xff]  }
  0x32   :  { %1561 = vmatprep.subr.bf16.mxu1 %v1696_v39 }
  0x33   :  { %1582 = vmatpush3.bf16.msra.mxu0 %v1697_v40  ;;  %vm1986_vm0 = vcmp.ne.s32.totalorder %v523_v37, 0  ;;  %vm2002_vm4 = vcmp.ne.s32.totalorder %v537_v1, 0  ;;  %vm2012_vm6 = vcmp.ne.s32.totalorder %v523_v37, 3  ;;  %vm573_vm10 = vcmp.ne.s32.totalorder %v537_v1, 3  ;;  %v1720_v1 = vld [vmem:[#allocation4 + $0x140] sm:$0xff]  }
  0x34   :  { %1583 = vmatprep.subr.bf16.mxu0 %v1699_v42 }
  0x35   :  { %1562 = vmatpush3.bf16.msra.mxu1 %v1696_v39 }
  0x36   :  { %1563 = vmatprep.subr.bf16.mxu1 %v1698_v41 }
  0x37   :  { %1584 = vmatpush3.bf16.msra.mxu0 %v1699_v42 }
  0x38   :  { %1585 = vmatprep.subr.bf16.mxu0 %v1701_v44 }
  0x39   :  { %1564 = vmatpush3.bf16.msra.mxu1 %v1698_v41  ;;  %v530_v41 = vand.u32 3, %v1791_v2 }
  0x3a   :  { %1565 = vmatprep.subr.bf16.mxu1 %v1700_v43 }
  0x3b   :  { %1586 = vmatpush3.bf16.msra.mxu0 %v1701_v44  ;;  %vm1990_vm2 = vcmp.ne.s32.totalorder %v530_v41, 0  ;;  %vm2016_vm7 = vcmp.ne.s32.totalorder %v530_v41, 3  ;;  %v1711_v41 = vld [vmem:[#allocation4 + $0x128] sm:$0xff]  }
  0x3c   :  { %vm1392_vm3 = vmpackc.low %vm1990_vm2, %vm1986_vm0 }
  0x3d   :  { %1566 = vmatpush3.bf16.msra.mxu1 %v1700_v43  ;;  %vm1406_vm9 = vmpackc.low %vm2016_vm7, %vm2012_vm6 }
  0x3e   :  { %1591 = vmatprep.subr.bf16.mxu1 %v1978_v45 }
  0xd6   :  { %v1521_v46 = vpop.f32.mrf.mxu0 }
  0xd8   :  { %v1525_v47 = vpop.f32.mrf.mxu1  ;;  %v265_v48 = vpop.f32.mrf.mxu0 }
  0xda   :  { %v281_v49 = vpop.f32.mrf.mxu1  ;;  %v1522_v50 = vpop.f32.mrf.mxu0 }
  0xdc   :  { %v1526_v51 = vpop.f32.mrf.mxu1  ;;  %v268_v52 = vpop.f32.mrf.mxu0 }
  0xde   :  { %v284_v53 = vpop.f32.mrf.mxu1  ;;  %v1545_v55 = vpop.f32.mrf.mxu0 }
  0xe0   :  { %v1533_v54 = vpop.f32.mrf.mxu1  ;;  %v451_v59 = vpop.f32.mrf.mxu0 }
  0xe1   :  { %v363_v56 = vadd.f32 %v1533_v54, %v1521_v46 }
  0xe2   :  { %v354_v58 = vpop.f32.mrf.mxu1  ;;  %v1546_v63 = vpop.f32.mrf.mxu0 }
  0xe3   :  { %v484_v60 = vadd.f32 %v1545_v55, %v363_v56  ;;  %v355_v61 = vadd.f32 %v354_v58, %v265_v48 }
  0xe4   :  { %v1534_v62 = vpop.f32.mrf.mxu1  ;;  %v454_v8 = vpop.f32.mrf.mxu0 }
  0xe5   :  { %v497_v0 = vadd.f32 %v1375_v57, %v484_v60  ;;  %v482_v3 = vadd.f32 %v451_v59, %v355_v61  ;;  %v366_v6 = vadd.f32 %v1534_v62, %v1522_v50  ;;  %v544_v50 = vand.u32 3, %v1798_v5  ;;  %v1714_v5 = vld [vmem:[#allocation4 + $0x158] sm:$0xff]  }
  0xe6   :  { %v357_v7 = vpop.f32.mrf.mxu1  ;;  %v1549_v14 = vpop.f32.mrf.mxu0 }
  0xe7   :  { %v505_v9 = vmax.f32 %v497_v0, 0.0  ;;  %v495_v10 = vadd.f32 %v1375_v57, %v482_v3  ;;  %v485_v11 = vadd.f32 %v1546_v63, %v366_v6  ;;  %v358_v12 = vadd.f32 %v357_v7, %v268_v52  ;;  %v1412_v63 = vld [vmem:[%s2077_s2 + $0x1] ss:$0 sm:$0xff] }
  0xe8   :  { %v1537_v13 = vpop.f32.mrf.mxu1  ;;  %v467_v20 = vpop.f32.mrf.mxu0  ;;  %vm2008_vm5 = vcmp.ne.s32.totalorder %v544_v50, 0  ;;  %vm574_vm11 = vcmp.ne.s32.totalorder %v544_v50, 3  ;;  %v1721_v50 = vld [vmem:[#allocation4 + $0x100] sm:$0xff]  }
  0xe9   :  { %513 = vst [vmem:[#allocation2 + $0x18] sm:$0xff] %v505_v9  ;;  %v503_v15 = vmax.f32 %v495_v10, 0.0  ;;  %v498_v16 = vadd.f32 %v1375_v57, %v485_v11  ;;  %v483_v17 = vadd.f32 %v454_v8, %v358_v12  ;;  %v379_v18 = vadd.f32 %v1537_v13, %v1525_v47  ;;  %vm1395_vm8 = vmpackc.low %vm2008_vm5, %vm2002_vm4  ;;  %v1717_v47 = vld [vmem:[#allocation4 + $0x110] sm:$0xff]  }
  0xea   :  { %v370_v19 = vpop.f32.mrf.mxu1  ;;  %v1550_v26 = vpop.f32.mrf.mxu0  ;;  %vm1409_vm12 = vmpackc.low %vm574_vm11, %vm573_vm10 }
  0xeb   :  { %511 = vst [vmem:[#allocation2 + $0x8] sm:$0xff] %v503_v15  ;;  %v506_v21 = vmax.f32 %v498_v16, 0.0  ;;  %v496_v22 = vadd.f32 %v1375_v57, %v483_v17  ;;  %v488_v23 = vadd.f32 %v1549_v14, %v379_v18  ;;  %v371_v24 = vadd.f32 %v370_v19, %v281_v49  ;;  %v1719_v49 = vld [vmem:[#allocation4 + $0x108] sm:$0xff]  }
  0xec   :  { %v1538_v25 = vpop.f32.mrf.mxu1  ;;  %v470_v36 = vpop.f32.mrf.mxu0 }
  0xed   :  { %514 = vst [vmem:[#allocation2 + $0x20] sm:$0xff] %v506_v21  ;;  %v504_v27 = vmax.f32 %v496_v22, 0.0  ;;  %v501_v28 = vadd.f32 %v1375_v57, %v488_v23  ;;  %v486_v29 = vadd.f32 %v467_v20, %v371_v24  ;;  %v382_v30 = vadd.f32 %v1538_v25, %v1526_v51  ;;  %v1703_v25 = vld [vmem:[#allocation4 + $0xe0] sm:$0xff]  }
  0xee   :  { %v373_v31 = vpop.f32.mrf.mxu1 }
  0xef   :  { %512 = vst [vmem:[#allocation2 + $0x10] sm:$0xff] %v504_v27  ;;  %v509_v32 = vmax.f32 %v501_v28, 0.0  ;;  %v499_v33 = vadd.f32 %v1375_v57, %v486_v29  ;;  %v489_v34 = vadd.f32 %v1550_v26, %v382_v30  ;;  %v374_v35 = vadd.f32 %v373_v31, %v284_v53  ;;  %v1704_v28 = vld [vmem:[#allocation4 + $0xd8] sm:$0xff]   ;;  %v1705_v29 = vld [vmem:[#allocation4 + $0xd0] sm:$0xff]   ;;  %v1706_v30 = vld [vmem:[#allocation4 + $0xc8] sm:$0xff]  }
  0xf0   :  { %v1707_v31 = vld [vmem:[#allocation4 + $0xc0] sm:$0xff]  }
  0xf1   :  { %517 = vst [vmem:[#allocation2 + $0x38] sm:$0xff] %v509_v32  ;;  %v507_v38 = vmax.f32 %v499_v33, 0.0  ;;  %v502_v39 = vadd.f32 %v1375_v57, %v489_v34  ;;  %v487_v40 = vadd.f32 %v470_v36, %v374_v35  ;;  %v1708_v32 = vld [vmem:[#allocation4 + $0xb8] sm:$0xff]   ;;  %v1709_v33 = vld [vmem:[#allocation4 + $0xb0] sm:$0xff]  }
  0xf3   :  { %515 = vst [vmem:[#allocation2 + $0x28] sm:$0xff] %v507_v38  ;;  %v510_v42 = vmax.f32 %v502_v39, 0.0  ;;  %v500_v43 = vadd.f32 %v1375_v57, %v487_v40  ;;  %v1710_v40 = vld [vmem:[#allocation4 + $0x168] sm:$0xff]  }
  0xf4   :  { %v620_v44 = vld [vmem:[#allocation2 + $0x18] ss:$2 sm:$0xff]  ;;  %v628_v46 = vld [vmem:[#allocation2 + $0x19] ss:$2 sm:$0xff] }
  0xf5   :  { %518 = vst [vmem:[#allocation2 + $0x40] sm:$0xff] %v510_v42  ;;  %v508_v48 = vmax.f32 %v500_v43, 0.0  ;;  %v634_v54 = vmax.f32 %v620_v44, %v628_v46  ;;  %v1763_v42 = vmov 0.0   ;;  %v1713_v43 = vld [vmem:[#allocation4 + $0x120] sm:$0xff]   ;;  %v1715_v44 = vld [vmem:[#allocation4 + $0x118] sm:$0xff]   ;;  %v1716_v46 = vld [vmem:[#allocation4 + $0x150] sm:$0xff]  }
  0xf6   :  { %v618_v2 = vld [vmem:[#allocation2 + $0x8] ss:$2 sm:$0xff]  ;;  %v626_v51 = vld [vmem:[#allocation2 + $0x9] ss:$2 sm:$0xff]  ;;  %1611 = vmatprep.subr.bf16.mxu0 %v1763_v42 }
  0xf7   :  { %v576_v52 = vld [vmem:[#allocation2 + $0x6] ss:$2 sm:$0xff]  ;;  %516 = vst [vmem:[#allocation2 + $0x30] sm:$0xff] %v508_v48  ;;  %v633_v53 = vmax.f32 %v618_v2, %v626_v51  ;;  %v578_v55 = vld [vmem:[#allocation2 + $0x16] ss:$2 sm:$0xff] }
  0xf8   :  { %v584_v56 = vld [vmem:[#allocation2 + $0x7] ss:$2 sm:$0xff]  ;;  %v586_v57 = vld [vmem:[#allocation2 + $0x17] ss:$2 sm:$0xff]  ;;  %v850_v10 = vld [vmem:[#allocation2 + $0xa] ss:$2 sm:$0xff] }
  0xf9   :  { %v591_v58 = vmax.f32 %v576_v52, %v584_v56  ;;  %v592_v59 = vmax.f32 %v578_v55, %v586_v57  ;;  %v637_v60 = vpack.c.bf16 %v634_v54, %v633_v53  ;;  %v858_v11 = vld [vmem:[#allocation2 + $0xb] ss:$2 sm:$0xff]  ;;  %v1724_v52 = vld [vmem:[#allocation4 + $0x130] sm:$0xff]  }
  0xfa   :  { %v852_v0 = vld [vmem:[#allocation2 + $0x1a] ss:$2 sm:$0xff]  ;;  %v860_v7 = vld [vmem:[#allocation2 + $0x1b] ss:$2 sm:$0xff]  ;;  %v865_v24 = vmax.f32 %v850_v10, %v858_v11 }
  0xfb   :  { %v1393_v61 = vpack.c.bf16 %v592_v59, %v591_v58  ;;  %1567 = vmatprep.mubr.bf16.mxu1 %v637_v60  ;;  %v866_v20 = vmax.f32 %v852_v0, %v860_v7  ;;  %v1718_v48 = vld [vmem:[#allocation4 + $0x148] sm:$0xff]   ;;  %v1722_v2 = vld [vmem:[#allocation4 + $0x138] sm:$0xff]   ;;  %v1725_v53 = vld [vmem:[#allocation4 + $0xf0] sm:$0xff]  }
  0xfc   :  { %v624_v3 = vld [vmem:[#allocation2 + $0x38] ss:$2 sm:$0xff]  ;;  %v632_v6 = vld [vmem:[#allocation2 + $0x39] ss:$2 sm:$0xff]  ;;  %v1723_v51 = vld [vmem:[#allocation4 + $0xf8] sm:$0xff]  }
  0xfd   :  { %1587 = vmatprep.mubr.msk.bf16.mxu0 %vm1392_vm3, %v1393_v61  ;;  %v636_v16 = vmax.f32 %v624_v3, %v632_v6  ;;  %v1407_v27 = vpack.c.bf16 %v866_v20, %v865_v24  ;;  %v856_v35 = vld [vmem:[#allocation2 + $0x3a] ss:$2 sm:$0xff]  ;;  %v864_v36 = vld [vmem:[#allocation2 + $0x3b] ss:$2 sm:$0xff] }
  0xfe   :  { %v622_v12 = vld [vmem:[#allocation2 + $0x28] ss:$2 sm:$0xff]  ;;  %v630_v13 = vld [vmem:[#allocation2 + $0x29] ss:$2 sm:$0xff]  ;;  %v868_v38 = vmax.f32 %v856_v35, %v864_v36 }
  0xff   :  { %v580_v14 = vld [vmem:[#allocation2 + $0x26] ss:$2 sm:$0xff]  ;;  %v635_v15 = vmax.f32 %v622_v12, %v630_v13  ;;  %v582_v17 = vld [vmem:[#allocation2 + $0x36] ss:$2 sm:$0xff]  ;;  %v588_v18 = vld [vmem:[#allocation2 + $0x27] ss:$2 sm:$0xff] }
 0x100   :  { %v590_v19 = vld [vmem:[#allocation2 + $0x37] ss:$2 sm:$0xff]  ;;  %v593_v21 = vmax.f32 %v580_v14, %v588_v18  ;;  %v854_v34 = vld [vmem:[#allocation2 + $0x2a] ss:$2 sm:$0xff] }
 0x101   :  { %v594_v22 = vmax.f32 %v582_v17, %v590_v19  ;;  %v638_v23 = vpack.c.bf16 %v636_v16, %v635_v15  ;;  %v1731_v35 = vld [vmem:[#allocation4 + $0x180] sm:$0xff]   ;;  %v1732_v36 = vld [vmem:[#allocation4 + $0x178] sm:$0xff]  }
 0x103   :  { %v1396_v26 = vpack.c.bf16 %v594_v22, %v593_v21  ;;  %1568 = vmatmul.mubr.bf16.vlgmr.msra.gmra.mxu1 %v638_v23 }
 0x104   :  { %1592 = vmatpush3.bf16.msra.mxu1 %v1978_v45  ;;  %1607 = vmatprep.mubr.msk.bf16.mxu1 %vm1406_vm9, %v1407_v27  ;;  %v862_v45 = vld [vmem:[#allocation2 + $0x2b] ss:$2 sm:$0xff] }
 0x105   :  { %1588 = vmatmul.mubr.msk.bf16.vlgmr.msra.gmra.mxu0 %vm1395_vm8, %v1396_v26  ;;  %1593 = vmatprep.subr.bf16.mxu1 %v1703_v25  ;;  %v867_v37 = vmax.f32 %v854_v34, %v862_v45  ;;  %v1729_v34 = vld [vmem:[#allocation4 + $0x190] sm:$0xff]   ;;  %v1730_v45 = vld [vmem:[#allocation4 + $0x188] sm:$0xff]  }
 0x106   :  { %1612 = vmatpush3.bf16.msra.mxu0 %v1710_v40  ;;  %1627 = vmatprep.mubr.msk.bf16.mxu0 %vm1764_vm13, %v1763_v42  ;;  %v1429_v40 = vld [vmem:[%s2077_s2 + $0x2] ss:$0 sm:$0xff] }
 0x107   :  { %v1410_v39 = vpack.c.bf16 %v868_v38, %v867_v37  ;;  %1613 = vmatprep.subr.bf16.mxu0 %v1763_v42  ;;  %v1733_v37 = vld [vmem:[#allocation4 + $0x170] sm:$0xff]  }
 0x108   :  { %1594 = vmatpush3.bf16.msra.mxu1 %v1703_v25 }
 0x109   :  { %1595 = vmatprep.subr.bf16.mxu1 %v1704_v28 }
 0x10a   :  { %1614 = vmatpush3.bf16.msra.mxu0 %v1712_v4 }
 0x10b   :  { %1615 = vmatprep.subr.bf16.mxu0 %v1763_v42 }
 0x10c   :  { %1596 = vmatpush3.bf16.msra.mxu1 %v1704_v28 }
 0x10d   :  { %1597 = vmatprep.subr.bf16.mxu1 %v1705_v29 }
 0x10e   :  { %1616 = vmatpush3.bf16.msra.mxu0 %v1714_v5 }
 0x10f   :  { %1617 = vmatprep.subr.bf16.mxu0 %v1763_v42 }
 0x110   :  { %1598 = vmatpush3.bf16.msra.mxu1 %v1705_v29  ;;  %v1726_v29 = vld [vmem:[#allocation4 + $0x1a8] sm:$0xff]  }
 0x111   :  { %1599 = vmatprep.subr.bf16.mxu1 %v1706_v30 }
 0x112   :  { %1618 = vmatpush3.bf16.msra.mxu0 %v1716_v46 }
 0x113   :  { %1619 = vmatprep.subr.bf16.mxu0 %v1763_v42 }
 0x114   :  { %1600 = vmatpush3.bf16.msra.mxu1 %v1706_v30 }
 0x115   :  { %1601 = vmatprep.subr.bf16.mxu1 %v1707_v31 }
 0x116   :  { %1620 = vmatpush3.bf16.msra.mxu0 %v1718_v48 }
 0x117   :  { %1621 = vmatprep.subr.bf16.mxu0 %v1763_v42 }
 0x118   :  { %1602 = vmatpush3.bf16.msra.mxu1 %v1707_v31 }
 0x119   :  { %1603 = vmatprep.subr.bf16.mxu1 %v1708_v32 }
 0x11a   :  { %1622 = vmatpush3.bf16.msra.mxu0 %v1720_v1 }
 0x11b   :  { %1623 = vmatprep.subr.bf16.mxu0 %v1763_v42 }
 0x11c   :  { %1604 = vmatpush3.bf16.msra.mxu1 %v1708_v32  ;;  %v1727_v32 = vld [vmem:[#allocation4 + $0x1a0] sm:$0xff]  }
 0x11d   :  { %1605 = vmatprep.subr.bf16.mxu1 %v1709_v33 }
 0x11e   :  { %1624 = vmatpush3.bf16.msra.mxu0 %v1722_v2 }
 0x11f   :  { %1625 = vmatprep.subr.bf16.mxu0 %v1763_v42 }
 0x120   :  { %1606 = vmatpush3.bf16.msra.mxu1 %v1709_v33  ;;  %v1728_v33 = vld [vmem:[#allocation4 + $0x198] sm:$0xff]  }
 0x121   :  { %1631 = vmatprep.subr.bf16.mxu1 %v1763_v42 }
 0x122   :  { %1626 = vmatpush3.bf16.msra.mxu0 %v1724_v52 }
 0x123   :  { %1608 = vmatmul.mubr.msk.bf16.vlgmr.msra.gmra.mxu1 %vm1409_vm12, %v1410_v39  ;;  %1651 = vmatprep.subr.bf16.mxu0 %v1763_v42 }
 0x124   :  { %1632 = vmatpush3.bf16.msra.mxu1 %v1711_v41  ;;  %1647 = vmatprep.mubr.msk.bf16.mxu1 %vm1764_vm13, %v1763_v42 }
 0x125   :  { %1633 = vmatprep.subr.bf16.mxu1 %v1763_v42 }
 0x128   :  { %1634 = vmatpush3.bf16.msra.mxu1 %v1713_v43 }
 0x129   :  { %1635 = vmatprep.subr.bf16.mxu1 %v1763_v42 }
 0x12c   :  { %1636 = vmatpush3.bf16.msra.mxu1 %v1715_v44 }
 0x12d   :  { %1637 = vmatprep.subr.bf16.mxu1 %v1763_v42 }
 0x130   :  { %1638 = vmatpush3.bf16.msra.mxu1 %v1717_v47 }
 0x131   :  { %1639 = vmatprep.subr.bf16.mxu1 %v1763_v42 }
 0x134   :  { %1640 = vmatpush3.bf16.msra.mxu1 %v1719_v49 }
 0x135   :  { %1641 = vmatprep.subr.bf16.mxu1 %v1763_v42 }
 0x138   :  { %1642 = vmatpush3.bf16.msra.mxu1 %v1721_v50 }
 0x139   :  { %1643 = vmatprep.subr.bf16.mxu1 %v1763_v42 }
 0x13c   :  { %1644 = vmatpush3.bf16.msra.mxu1 %v1723_v51 }
 0x13d   :  { %1645 = vmatprep.subr.bf16.mxu1 %v1763_v42 }
 0x140   :  { %1646 = vmatpush3.bf16.msra.mxu1 %v1725_v53 }
 0x1c3   :  { %v1569_v54 = vpop.f32.mrf.mxu1 }
 0x1c5   :  { %v1589_v55 = vpop.f32.mrf.mxu0  ;;  %v737_v56 = vpop.f32.mrf.mxu1 }
 0x1c6   :  { %v843_v61 = vadd.f32 %v1589_v55, %v1569_v54 }
 0x1c7   :  { %v834_v57 = vpop.f32.mrf.mxu0  ;;  %v1570_v58 = vpop.f32.mrf.mxu1 }
 0x1c8   :  { %v835_v0 = vadd.f32 %v834_v57, %v737_v56 }
 0x1c9   :  { %v1590_v59 = vpop.f32.mrf.mxu0  ;;  %v740_v60 = vpop.f32.mrf.mxu1 }
 0x1ca   :  { %v846_v8 = vadd.f32 %v1590_v59, %v1570_v58 }
 0x1cb   :  { %v837_v6 = vpop.f32.mrf.mxu0 }
 0x1cc   :  { %v838_v12 = vadd.f32 %v837_v6, %v740_v60 }
 0x1e3   :  { %v1609_v62 = vpop.f32.mrf.mxu1 }
 0x1e4   :  { %v990_v3 = vadd.f32 %v1609_v62, %v843_v61 }
 0x1e5   :  { %v973_v7 = vpop.f32.mrf.mxu1 }
 0x1e6   :  { %v999_v9 = vadd.f32 %v1412_v63, %v990_v3  ;;  %v988_v10 = vadd.f32 %v973_v7, %v835_v0 }
 0x1e7   :  { %v1610_v11 = vpop.f32.mrf.mxu1 }
 0x1e8   :  { %v1003_v13 = vmax.f32 %v999_v9, 0.0  ;;  %v997_v14 = vadd.f32 %v1412_v63, %v988_v10  ;;  %v991_v15 = vadd.f32 %v1610_v11, %v846_v8 }
 0x1e9   :  { %v976_v16 = vpop.f32.mrf.mxu1 }
 0x1ea   :  { %1007 = vst [vmem:[#allocation3 + $0x10] sm:$0xff] %v1003_v13  ;;  %v1001_v17 = vmax.f32 %v997_v14, 0.0  ;;  %v1000_v18 = vadd.f32 %v1412_v63, %v991_v15  ;;  %v989_v19 = vadd.f32 %v976_v16, %v838_v12 }
 0x1ec   :  { %1005 = vst [vmem:[#allocation3] sm:$0xff] %v1001_v17  ;;  %v1004_v20 = vmax.f32 %v1000_v18, 0.0  ;;  %v998_v21 = vadd.f32 %v1412_v63, %v989_v19 }
 0x1ee   :  { %1008 = vst [vmem:[#allocation3 + $0x18] sm:$0xff] %v1004_v20  ;;  %v1002_v22 = vmax.f32 %v998_v21, 0.0 }
 0x1f0   :  { %1006 = vst [vmem:[#allocation3 + $0x8] sm:$0xff] %v1002_v22 }
 0x1f7   :  { %v1031_v23 = vld [vmem:[#allocation3 + $0x2] ss:$4 sm:$0xff]  ;;  %v1033_v24 = vld [vmem:[#allocation3 + $0x3] ss:$4 sm:$0xff]  ;;  %v1009_v25 = vld [vmem:[#allocation3] ss:$4 sm:$0xff] }
 0x1f8   :  { %v1034_v26 = vmax.f32 %v1031_v23, %v1033_v24  ;;  %v1011_v27 = vld [vmem:[#allocation3 + $0x1] ss:$4 sm:$0xff] }
 0x1f9   :  { %v1012_v28 = vmax.f32 %v1009_v25, %v1011_v27 }
 0x1fa   :  { %v1035_v30 = vpack.c.bf16 %v1034_v26, %v1034_v26 }
 0x1fb   :  { %v1013_v31 = vpack.c.bf16 %v1012_v28, %v1012_v28 }
 0x1fc   :  { %1628 = vmatmul.mubr.bf16.vlgmr.msra.gmra.mxu0 %v1035_v30 }
 0x1fd   :  { %1648 = vmatmul.mubr.bf16.vlgmr.msra.gmra.mxu1 %v1013_v31  ;;  %1652 = vmatpush3.bf16.msra.mxu0 %v1726_v29 }
 0x1fe   :  { %1653 = vmatprep.subr.bf16.mxu0 %v1763_v42  ;;  %1667 = vmatprep.mubr.msk.bf16.mxu0 %vm1764_vm13, %v1763_v42 }
 0x201   :  { %1654 = vmatpush3.bf16.msra.mxu0 %v1727_v32 }
 0x202   :  { %1655 = vmatprep.subr.bf16.mxu0 %v1763_v42 }
 0x205   :  { %1656 = vmatpush3.bf16.msra.mxu0 %v1728_v33 }
 0x206   :  { %1657 = vmatprep.subr.bf16.mxu0 %v1763_v42 }
 0x209   :  { %1658 = vmatpush3.bf16.msra.mxu0 %v1729_v34 }
 0x20a   :  { %1659 = vmatprep.subr.bf16.mxu0 %v1763_v42 }
 0x20d   :  { %1660 = vmatpush3.bf16.msra.mxu0 %v1730_v45 }
 0x20e   :  { %1661 = vmatprep.subr.bf16.mxu0 %v1763_v42 }
 0x211   :  { %1662 = vmatpush3.bf16.msra.mxu0 %v1731_v35 }
 0x212   :  { %1663 = vmatprep.subr.bf16.mxu0 %v1763_v42 }
 0x215   :  { %1664 = vmatpush3.bf16.msra.mxu0 %v1732_v36 }
 0x216   :  { %1665 = vmatprep.subr.bf16.mxu0 %v1763_v42  ;;  %v1430_v42 = vld [vmem:[%s2077_s2 + $0x3] ss:$0 sm:$0xff] }
 0x219   :  { %1666 = vmatpush3.bf16.msra.mxu0 %v1733_v37 }
 0x2bc   :  { %v1134_v38 = vpop.f32.mrf.mxu0 }
 0x2bd   :  { %v1222_v39 = vpop.f32.mrf.mxu1 }
 0x2be   :  { %v1223_v41 = vadd.f32 %v1222_v39, %v1134_v38  ;;  %v1629_v4 = vpop.f32.mrf.mxu0 }
 0x2bf   :  { %v1649_v43 = vpop.f32.mrf.mxu1 }
 0x2c0   :  { %v1233_v5 = vadd.f32 %v1429_v40, %v1223_v41  ;;  %v1137_v44 = vpop.f32.mrf.mxu0 }
 0x2c1   :  { %v1225_v46 = vpop.f32.mrf.mxu1 }
 0x2c2   :  { %v1234_v47 = vmax.f32 %v1233_v5, 0.0  ;;  %v1630_v48 = vpop.f32.mrf.mxu0 }
 0x2c3   :  { %v1650_v49 = vpop.f32.mrf.mxu1 }
 0x2c4   :  { %v1235_v1 = vpack.c.bf16 %v1234_v47, %v1234_v47 }
 0x2c6   :  { %1668 = vmatmul.mubr.bf16.vlgmr.msra.gmra.mxu0 %v1235_v1 }
 0x386   :  { %v1339_v50 = vpop.f32.mrf.mxu0 }
 0x387   :  { %v1340_v2 = vadd.f32 %v1430_v42, %v1339_v50 }
 0x388   :  { %v1669_v51 = vpop.f32.mrf.mxu0 }
 0x389   :  { %v1439_v52 = vmul.f32 -1.442695, %v1340_v2 }
 0x38a   :  { %v1342_v53 = vpop.f32.mrf.mxu0 }
 0x38b   :  { %1734 = vpow2.f32 %v1439_v52 }
 0x38c   :  { %v1670_v54 = vpop.f32.mrf.mxu0 }
 0x398   :  { %v1735_v55 = vpop.eup %1734 }
 0x399   :  { %v1348_v56 = vadd.f32 1.0, %v1735_v55 }
 0x39b   :  { %1736 = vrcp.f32 %v1348_v56 }
 0x3a8   :  { %v1737_v57 = vpop.eup %1736 }
 0x3a9   :  { %1351 = vst [vmem:[%s2078_s3] sm:$0xff] %v1737_v57 }
 0x3aa   :  { %1356 = vsyncpa [#allocation5], 1 }

</bundles_post_ra>
